<compile_context>
chip_gen: v7x
topology: tpu7x:2x2x1
jax: 0.10.0
libtpu: 0.0.40
codegen_flags: <defaults>
</compile_context>

<pallas_src>
import functools

import jax
import jax.numpy as jnp
from jax import lax
from jax.experimental import pallas as pl
from jax.experimental.pallas import tpu as pltpu


def _round_up(v: int, m: int) -> int:
    return ((v + m - 1) // m) * m


def _cdiv(a: int, b: int) -> int:
    return -(-a // b)


def _avgpool1d_kernel(x_ref, o_ref, *, kernel, stride, inv_kernel):
    """One (TR, L) row tile of x -> one (TR, TN) lane-dense tile of the output.

    The (L, TN) column band of the 0/1 pooling matrix is generated in-kernel
    (two iotas + compares) instead of being streamed from HBM.
    """
    l = x_ref.shape[1]
    tn = o_ref.shape[1]
    j = pl.program_id(1)  # which L_out tile

    t = lax.broadcasted_iota(jnp.int32, (l, tn), 0)                 # input position
    col = lax.broadcasted_iota(jnp.int32, (l, tn), 1) + j * tn      # global out column
    start = col * stride
    p = ((t >= start) & (t < start + kernel)).astype(x_ref.dtype)   # exact 0/1

    acc = jnp.dot(x_ref[...], p, preferred_element_type=jnp.float32)
    o_ref[...] = (acc * inv_kernel).astype(o_ref.dtype)


def avg_pool_decoding(x, kernel: int, stride: int):
    """Equivalent of nn.AvgPool1d(kernel, stride) applied to x of shape (N, C, L)."""
    assert kernel >= 1 and stride >= 1
    n, c, l = x.shape
    l_out = (l - kernel) // stride + 1
    assert l_out >= 1, "input length too short for the pooling window"

    rows = n * c
    x2 = x.reshape(rows, l)
    itemsize = jnp.dtype(x.dtype).itemsize
    sub = max(8, 32 // itemsize)   # sublane packing: 8 (f32), 16 (bf16), 32 (int8)
    lane = 128

    # --- generation-aware VMEM budget ----------------------------------------
    try:
        vmem_cap = int(pltpu.get_tpu_info().vmem_capacity_bytes)
    except Exception:
        vmem_cap = 64 * 1024 * 1024          # conservative fallback: v7x per-core VMEM
    vmem_budget = min((vmem_cap * 2) // 5, 56 * 1024 * 1024)  # ~25 MiB v7x, ~51 MiB v5e/v6e

    # --- output-column tiling (TN), lane-dense (multiple of 128) -------------
    p_budget = vmem_budget // 4
    p_bytes_per_col = l * (itemsize + 4)     # P band column + iota/compare temps
    l_out_lane = _round_up(l_out, lane)
    if l_out_lane <= 2048 and l_out_lane * p_bytes_per_col <= p_budget:
        tn = l_out_lane                      # single lane-dense output tile
    else:
        tn = max(lane, ((p_budget // max(p_bytes_per_col, 1)) // lane) * lane)
        tn = min(tn, 2048)
        if tn > 256:
            tn = (tn // 256) * 256           # prefer v6e/v7x 256-wide MXU tiles
    l_out_pad = _round_up(l_out, tn)
    num_j = l_out_pad // tn

    # --- row tiling (TR): bytes-based, budgeted against the in-kernel P band --
    per_row_bytes = 2 * (l + tn) * itemsize + tn * 4   # dbl-buffered x/out tiles + f32 acc
    p_tile_bytes = tn * p_bytes_per_col
    avail = max(vmem_budget - p_tile_bytes, vmem_budget // 8)
    tr = max(sub, avail // per_row_bytes)
    # keep the x tile in the few-MiB sweet spot (amortizes the ~0.35us/step overhead)
    tr = min(tr, max(sub, (8 * 1024 * 1024) // max(l * itemsize, 1)))
    tr = max(sub, (tr // sub) * sub)
    tr = min(tr, _round_up(rows, sub))
    # give megacore (v7x) at least two row tiles to shard when rows allow it
    if rows >= 2 * sub and _cdiv(rows, tr) < 2:
        tr = max(sub, _round_up(_cdiv(rows, 2), sub))
    num_i = _cdiv(rows, tr)

    grid = (num_i, num_j)  # j innermost: the x row-tile block index is unchanged
                           # across the j sweep, so x is not re-fetched from HBM.

    out2 = pl.pallas_call(
        functools.partial(
            _avgpool1d_kernel,
            kernel=kernel,
            stride=stride,
            inv_kernel=1.0 / float(kernel),
        ),
        out_shape=jax.ShapeDtypeStruct((rows, l_out_pad), x.dtype),
        grid=grid,
        in_specs=[pl.BlockSpec((tr, l), lambda i, j: (i, 0))],
        out_specs=pl.BlockSpec((tr, tn), lambda i, j: (i, j)),
        compiler_params=pltpu.CompilerParams(
            dimension_semantics=("parallel", "parallel"),
            vmem_limit_bytes=int(vmem_budget),
        ),
    )(x2)

    # Slice off lane padding of L_out and restore (N, C, L_out).
    return out2[:, :l_out].reshape(n, c, l_out)


def _reference(x, kernel, stride):
    l = x.shape[-1]
    l_out = (l - kernel) // stride + 1
    return jnp.stack(
        [jnp.mean(x[..., j * stride: j * stride + kernel], axis=-1) for j in range(l_out)],
        axis=-1,
    )


if __name__ == "__main__":
    # Module __init__ hyper-params (no learned weights in AvgPool1d).
    KERNEL = 4
    STRIDE = 2

    key = jax.random.PRNGKey(0)
    # (batch=2, channels=4, seq_len=16), matching AvgPool1d's (N, C, L) input.
    x = jax.random.normal(key, (2, 4, 16), dtype=jnp.float32)

    y = jax.block_until_ready(avg_pool_decoding(x, KERNEL, STRIDE))
    ref = _reference(x, KERNEL, STRIDE)
    assert y.shape == ref.shape == (2, 4, 7), y.shape
    assert jnp.allclose(y, ref, atol=1e-5, rtol=1e-5), "mismatch vs reference (config 1)"

    # Second config: exercises multiple row tiles AND a partial tail row block
    # (rows=24, tr forced to 16 -> masked store on the last block), plus ragged L.
    x2 = jax.random.normal(jax.random.PRNGKey(0), (3, 8, 33), dtype=jnp.float32)
    y2 = jax.block_until_ready(avg_pool_decoding(x2, 5, 3))
    ref2 = _reference(x2, 5, 3)
    assert y2.shape == ref2.shape == (3, 8, 10), y2.shape
    assert jnp.allclose(y2, ref2, atol=1e-5, rtol=1e-5), "mismatch vs reference (config 2)"

    print("KERNEL_OK")
</pallas_src>

<mosaic_0001>
module attributes {stable_mosaic.version = 11 : i64} {
  func.func @_avgpool1d_kernel(%arg0: i32, %arg1: i32, %arg2: memref<8x16xf32, #tpu.memory_space<vmem>>, %arg3: memref<8x128xf32, #tpu.memory_space<vmem>>) attributes {dimension_semantics = [#tpu.dimension_semantics<parallel>, #tpu.dimension_semantics<parallel>], iteration_bounds = array<i64: 1, 1>, scalar_prefetch = 0 : i64, scratch_operands = 0 : i64, tpu.core_type = #tpu.core_type<tc>, window_params = [{transform_indices = @transform_0, window_bounds = array<i64: 8, 16>}, {transform_indices = @transform_1, window_bounds = array<i64: 8, 128>}]} {
    %0 = tpu.iota {dimensions = array<i32: 0>} : vector<16x128xi32>
    %1 = tpu.iota {dimensions = array<i32: 1>} : vector<16x128xi32>
    %c128_i32 = arith.constant 128 : i32
    %2 = arith.muli %arg1, %c128_i32 : i32
    %3 = vector.broadcast %2 : i32 to vector<16x128xi32>
    %4 = arith.addi %1, %3 : vector<16x128xi32>
    %c2_i32 = arith.constant 2 : i32
    %5 = vector.broadcast %c2_i32 : i32 to vector<16x128xi32>
    %6 = arith.muli %4, %5 : vector<16x128xi32>
    %7 = arith.cmpi sge, %0, %6 : vector<16x128xi32>
    %c4_i32 = arith.constant 4 : i32
    %8 = vector.broadcast %c4_i32 : i32 to vector<16x128xi32>
    %9 = arith.addi %6, %8 : vector<16x128xi32>
    %10 = arith.cmpi slt, %0, %9 : vector<16x128xi32>
    %11 = arith.andi %7, %10 : vector<16x128xi1>
    %12 = arith.extui %11 : vector<16x128xi1> to vector<16x128xi32>
    %13 = arith.sitofp %12 : vector<16x128xi32> to vector<16x128xf32>
    %c0 = arith.constant 0 : index
    %c0_0 = arith.constant 0 : index
    %14 = vector.load %arg2[%c0, %c0_0] : memref<8x16xf32, #tpu.memory_space<vmem>>, vector<8x16xf32>
    %cst = arith.constant dense<0.000000e+00> : vector<8x128xf32>
    %15 = tpu.matmul %14, %13, %cst {dimension_numbers = #tpu.dot_dimension_numbers<[1], [0], [0], [1], [0, 0, 1, 1], [], []>} : vector<8x16xf32>, vector<16x128xf32>, vector<8x128xf32> -> vector<8x128xf32>
    %cst_1 = arith.constant 2.500000e-01 : f32
    %16 = vector.broadcast %cst_1 : f32 to vector<8x128xf32>
    %17 = arith.mulf %15, %16 : vector<8x128xf32>
    %c0_2 = arith.constant 0 : index
    %c0_3 = arith.constant 0 : index
    %18 = vector.load %arg3[%c0_2, %c0_3] : memref<8x128xf32, #tpu.memory_space<vmem>>, vector<8x128xf32>
    tpu.vector_store %arg3[%c0_2, %c0_3], %17 {strides = array<i32>} : memref<8x128xf32, #tpu.memory_space<vmem>>, vector<8x128xf32>,
    return
  }
  func.func @transform_0(%arg0: i32, %arg1: i32) -> (i32, i32) {
    %c0_i32 = arith.constant 0 : i32
    %c0_i32_0 = arith.constant 0 : i32
    return %arg0, %c0_i32 : i32, i32
  }
  func.func @transform_1(%arg0: i32, %arg1: i32) -> (i32, i32) {
    %c0_i32 = arith.constant 0 : i32
    return %arg0, %arg1 : i32, i32
  }
}

</mosaic_0001>

<bundles_post_ra>
// kernel: tpu_custom_call.1
= control target key start
LH: loop header
LB: loop body
LE: loop exit
PB: predicated region body
PF: predicated region fallthrough
CT: control target
= control target key end

     0   :  { %6 = vsyncpa [#allocation3], 0  ;;  %s245_s0 = inlined_call_operand.hbm [shape: f32[8,16], index: 0, kind: input, shape index: {}]   ;;  %s246_s1 = inlined_call_operand.hbm [shape: f32[8,128], index: 1, kind: output, shape index: {}]  }
   0x1   :  { %7 = vsyncpa [#allocation4], 0  ;;  %s205_s6 = smov [#allocation2]   ;;  %s157_s10 = scalar_lea.hbm %s245_s0, 128 }
   0x2   :  { %s14_s7 = sshll.u32 %s205_s6, 4  ;;  %p158_p0 = scmp.ne.s32.totalorder %s245_s0, %s157_s10  ;;  %s15_s7 = int_to_ptr.vmem [resolvable:$true] %s14_s7 }
   0x3   :  { %p161_p1 = scmp.lt.u32.totalorder %s157_s10, %s245_s0 }
   0x5   :  { %p163_p2 = pnand %p161_p1, %p158_p0 }
   0x7   :  { %166 = shalt.err (!%p163_p2)
}
   0x8   :  { %s167_s15 = scalar_lea.vmem %s15_s7, 128  ;;  %p172_p4 = scmp.lt.s32.totalorder %s15_s7, %s15_s7 }
   0x9   :  { %p168_p3 = scmp.ne.s32.totalorder %s15_s7, %s167_s15  ;;  %p173_p5 = scmp.lt.s32.totalorder %s167_s15, %s167_s15 }
   0xb   :  { %p174_p6 = por %p173_p5, %p172_p4 }
   0xd   :  { %p175_p7 = pnand %p174_p6, %p168_p3 }
   0xf   :  { %178 = shalt.err (!%p175_p7)
}
  0x10   :  { %17 = dma.hbm_to_vmem [thread:$0]  %s245_s0, 128, %s15_s7, [#allocation3]  }
  0x11   :  { %201 = dma.done.wait [#allocation3], 128  }
  0x12   :  { %202 = vsyncadd [#allocation3], 4294967168  ;;  %v21_v0 = vlaneseq  ;;  %v206_v1 = vmov 0.0|0.0   ;;  %vm207_vm0 = vmmov 0   ;;  %v208_v4 = vmov 0.0   ;;  %v41_v9 = vld [vmem:[#allocation2] sm:$0xff] }
  0x13   :  { %148 = vmatprep.subr.bf16.mxu0 %v206_v1  ;;  %145 = vmatprep.mubr.msk.f32.mxu0 %vm207_vm0, %v208_v4  ;;  %v209_v8 = vmov 1.0|1.0   ;;  %vm42_vm8 = vcmask 130048   ;;  %s210_s0 = smov [#allocation5]  }
  0x14   :  { %v22_v2 = vshrl.u32 %v21_v0, 7  ;;  %v25_v3 = vand.u32 127, %v21_v0  ;;  %s124_s18 = sshll.u32 %s210_s0, 4  ;;  %s125_s18 = int_to_ptr.vmem [resolvable:$true] %s124_s18 }
  0x15   :  { %s179_s19 = scalar_lea.vmem %s125_s18, 128  ;;  %p184_p9 = scmp.lt.s32.totalorder %s125_s18, %s125_s18 }
  0x16   :  { %v23_v5 = vadd.s32 8, %v22_v2  ;;  %v29_v6 = vmul.u32 2, %v25_v3  ;;  %p180_p8 = scmp.ne.s32.totalorder %s125_s18, %s179_s19  ;;  %p185_p10 = scmp.lt.s32.totalorder %s179_s19, %s179_s19 }
  0x18   :  { %vm30_vm1 = vcmp.ge.s32.totalorder %v22_v2, %v29_v6  ;;  %v32_v7 = vadd.s32 4, %v29_v6  ;;  %vm31_vm2 = vcmp.ge.s32.totalorder %v23_v5, %v29_v6  ;;  %p186_p11 = por %p185_p10, %p184_p9 }
  0x1a   :  { %vm33_vm3 = vcmp.lt.s32.totalorder %v22_v2, %v32_v7  ;;  %vm34_vm4 = vcmp.lt.s32.totalorder %v23_v5, %v32_v7  ;;  %p187_p12 = pnand %p186_p11, %p180_p8 }
  0x1b   :  { %vm35_vm5 = vmand %vm30_vm1, %vm33_vm3 }
  0x1c   :  { %vm36_vm6 = vmand %vm31_vm2, %vm34_vm4 }
  0x1d   :  { %vm149_vm7 = vmpackc.low %vm36_vm6, %vm35_vm5 }
  0x1e   :  { %150 = vmatpush3.bf16.msk.msra.mxu0 %vm149_vm7, %v209_v8 }
  0x21   :  { %146 = vmatmul.mubr.msk.f32.vlgmr.msra.gmra.mrb[0].mxu0 %vm42_vm8, %v41_v9 }
  0xf4   :  { %v112_v10 = vpop.f32.mrb[0].mxu0 }
  0xf5   :  { %v116_v11 = vmul.f32 0.25, %v112_v10  ;;  %v147_v12 = vpop.f32.mrb[1].mxu0 }
  0xf7   :  { %117 = vst [vmem:[#allocation5] sm:$0xff] %v116_v11 }
  0xf8   :  { %190 = shalt.err (!%p187_p12)
}
  0xf9   :  { %s191_s22 = scalar_lea.hbm %s246_s1, 128 }
  0xfa   :  { %p192_p13 = scmp.ne.s32.totalorder %s246_s1, %s191_s22  ;;  %p195_p0 = scmp.lt.u32.totalorder %s191_s22, %s246_s1 }
  0xfc   :  { %p197_p1 = pnand %p195_p0, %p192_p13 }
  0xfe   :  { %200 = shalt.err (!%p197_p1)
}
  0xff   :  { %127 = dma.vmem_to_hbm [thread:$0]  %s125_s18, 128, %s246_s1, [#allocation4]  }
 0x100   :  { %203 = dma.done.wait [#allocation4], 128  }
 0x101   :  { %204 = vsyncadd [#allocation4], 4294967168 }
 0x102   :  { %131 = vsyncpa [#allocation3], 1 }
 0x103   :  { %132 = vsyncpa [#allocation4], 1 }

</bundles_post_ra>
